<compile_context>
chip_gen: v5e
topology: v5e:2x2
jax: 0.10.0
libtpu: 0.0.40
codegen_flags: <defaults>
</compile_context>

<pallas_src>
import jax
import jax.numpy as jnp
import numpy as np
from jax.experimental import pallas as pl
from jax.experimental.pallas import tpu as pltpu


# ----------------------------- config ---------------------------------------
class Config:
    embed = 32
    num_filters = 8
    filter_sizes = (2, 3, 4)
    num_classes = 5
    dropout = 0.5  # identity at inference time


# ----------------------------- kernel ---------------------------------------
def make_textcnn_kernel(filter_sizes, num_filters):
    F = num_filters
    # static column offset of each conv's tap-block inside the fused weight
    col_offsets = []
    col = 0
    for k in filter_sizes:
        col_offsets.append(col)
        col += k * F

    def kernel(x_ref, w_ref, b_ref, fcw_ref, fcb_ref, out_ref):
        TB, S, E = x_ref.shape

        # One fused MXU matmul for every tap of every conv:
        # (TB*S, E) bf16 x (E, C_pad=128) bf16 -> f32
        x2d = x_ref[...].reshape(TB * S, E)
        y = jnp.dot(x2d, w_ref[...], preferred_element_type=jnp.float32)
        y = y.reshape(TB, S, y.shape[-1])                 # (TB, S, C_pad) f32

        logits = jnp.zeros((TB, out_ref.shape[-1]), jnp.float32)
        for i, k in enumerate(filter_sizes):
            T = S - k + 1
            c0 = col_offsets[i]
            # conv output = sum of time-shifted slices of the NARROW (F-wide)
            # matmul output (instead of shifting the wide E=32 input).
            acc = y[:, 0:T, c0:c0 + F]
            for dk in range(1, k):
                acc = acc + y[:, dk:dk + T, c0 + dk * F:c0 + (dk + 1) * F]
            # max-pool over time first (XLU reduce, free slot), THEN bias+ReLU
            # on (TB, F) instead of (TB, T, F).
            pooled = jnp.max(acc, axis=1)                        # (TB, F)
            feat = jnp.maximum(pooled + b_ref[i:i + 1, :], 0.0)  # (TB, F)
            # FC as a sum of partial dots -> no cross-lane concat of 8-wide
            # chunks; output stays lane-dense (128 lanes).
            logits = logits + jnp.dot(
                feat.astype(fcw_ref.dtype),
                fcw_ref[i * F:(i + 1) * F, :],
                preferred_element_type=jnp.float32,
            )

        # TODO(synk): nn.Dropout is identity in eval mode; train-mode
        # mask/scale is intentionally not implemented in this kernel.
        logits = logits + fcb_ref[...]
        out_ref[...] = logits.astype(out_ref.dtype)

    return kernel


# ----------------------------- wrapper ---------------------------------------
def textcnn_forward(x, conv_params, fc_w, fc_b, config, block_b=128):
    """x: (B, S, E) f32.  conv_params: list of (w_k (k,E,F), b_k (F,))."""
    B, S, E = x.shape
    F = config.num_filters
    filter_sizes = tuple(config.filter_sizes)
    n_convs = len(filter_sizes)
    if S < max(filter_sizes):
        raise ValueError(
            f"seq_len={S} must be >= max filter size {max(filter_sizes)}")

    # --- fused conv-tap weights: (E, sum_k k*F) -> lane-padded (E, 128), bf16
    blocks = []
    for w_k, _ in conv_params:
        k = w_k.shape[0]
        # (k, E, F) -> (E, k*F) with tap blocks of F columns in order dk=0..k-1
        blocks.append(jnp.transpose(w_k, (1, 0, 2)).reshape(E, k * F))
    w_all = jnp.concatenate(blocks, axis=1)
    c_total = w_all.shape[1]
    c_pad = ((c_total + 127) // 128) * 128
    w_all = jnp.pad(w_all, ((0, 0), (0, c_pad - c_total))).astype(jnp.bfloat16)

    b_all = jnp.stack([b_k for _, b_k in conv_params]).astype(jnp.float32)  # (n_convs, F)

    # --- lane-dense FC weights / bias / output slab
    nc = config.num_classes
    nc_pad = ((nc + 127) // 128) * 128
    fc_w_pad = jnp.pad(fc_w, ((0, 0), (0, nc_pad - nc))).astype(jnp.bfloat16)
    fc_b_pad = jnp.pad(fc_b.reshape(1, -1),
                       ((0, 0), (0, nc_pad - nc))).astype(jnp.float32)

    # --- batch grid (pipelined DMA at real batch sizes; single block if small)
    if B <= block_b:
        tb, b_pad = B, B
    else:
        tb = block_b                       # multiple of 8 -> aligned blocks
        b_pad = pl.cdiv(B, tb) * tb
    xb = x.astype(jnp.bfloat16)
    if b_pad != B:
        xb = jnp.pad(xb, ((0, b_pad - B), (0, 0), (0, 0)))

    kernel = make_textcnn_kernel(filter_sizes, F)

    out = pl.pallas_call(
        kernel,
        out_shape=jax.ShapeDtypeStruct((b_pad, nc_pad), jnp.float32),
        grid=(b_pad // tb,),
        in_specs=[
            pl.BlockSpec((tb, S, E), lambda b: (b, 0, 0)),          # x tile
            pl.BlockSpec((E, c_pad), lambda b: (0, 0)),             # fused conv W
            pl.BlockSpec((n_convs, F), lambda b: (0, 0)),           # conv biases
            pl.BlockSpec((n_convs * F, nc_pad), lambda b: (0, 0)),  # fc W (padded)
            pl.BlockSpec((1, nc_pad), lambda b: (0, 0)),            # fc bias
        ],
        out_specs=pl.BlockSpec((tb, nc_pad), lambda b: (b, 0)),
        compiler_params=pltpu.CompilerParams(
            dimension_semantics=("parallel",)),   # batch shards across TCs (v7x)
    )(xb, w_all, b_all, fc_w_pad, fc_b_pad)

    return out[:B, :nc]


# --------------------------- param init --------------------------------------
def init_params(config, key):
    keys = jax.random.split(key, 2 * len(config.filter_sizes) + 2)
    conv_params = []
    for i, k in enumerate(config.filter_sizes):
        # equivalent of Conv2d(1, F, (k, E)) weight, stored as (k, E, F)
        w_k = jax.random.normal(
            keys[2 * i], (k, config.embed, config.num_filters), jnp.float32) * 0.1
        b_k = jax.random.normal(
            keys[2 * i + 1], (config.num_filters,), jnp.float32) * 0.1
        conv_params.append((w_k, b_k))

    in_features = config.num_filters * len(config.filter_sizes)
    # equivalent of Linear(in_features, num_classes), stored as (in, out)
    fc_w = jax.random.normal(
        keys[-2], (in_features, config.num_classes), jnp.float32) * 0.1
    fc_b = jax.random.normal(keys[-1], (config.num_classes,), jnp.float32) * 0.1
    return conv_params, fc_w, fc_b


# ------------------------ pure-JAX reference ----------------------------------
def textcnn_reference(x, conv_params, fc_w, fc_b):
    feats = []
    for w_k, b_k in conv_params:
        k = w_k.shape[0]
        T = x.shape[1] - k + 1
        acc = jnp.zeros((x.shape[0], T, w_k.shape[2]), jnp.float32)
        for dk in range(k):
            acc = acc + jnp.einsum("bte,ef->btf", x[:, dk:dk + T, :], w_k[dk])
        acc = jnp.maximum(acc + b_k[None, None, :], 0.0)
        feats.append(jnp.max(acc, axis=1))
    feat = jnp.concatenate(feats, axis=1)
    return feat @ fc_w + fc_b


# ------------------------------- main ----------------------------------------
if __name__ == "__main__":
    cfg = Config()
    key = jax.random.PRNGKey(0)
    k_x, k_p = jax.random.split(key)

    B, S = 2, 16
    x = jax.random.normal(k_x, (B, S, cfg.embed), jnp.float32)
    conv_params, fc_w, fc_b = init_params(cfg, k_p)

    out = textcnn_forward(x, conv_params, fc_w, fc_b, cfg)
    out = jax.block_until_ready(out)
    assert out.shape == (B, cfg.num_classes), out.shape

    # loose tolerance: kernel uses bf16 operands with f32 accumulation
    ref = textcnn_reference(x, conv_params, fc_w, fc_b)
    np.testing.assert_allclose(np.asarray(out), np.asarray(ref),
                               atol=0.1, rtol=0.1)

    print("KERNEL_OK")
</pallas_src>

<mosaic_0001>
module attributes {stable_mosaic.version = 11 : i64} {
  func.func @kernel(%arg0: i32, %arg1: memref<2x16x32xbf16, #tpu.memory_space<vmem>>, %arg2: memref<32x128xbf16, #tpu.memory_space<vmem>>, %arg3: memref<3x8xf32, #tpu.memory_space<vmem>>, %arg4: memref<24x128xbf16, #tpu.memory_space<vmem>>, %arg5: memref<1x128xf32, #tpu.memory_space<vmem>>, %arg6: memref<2x128xf32, #tpu.memory_space<vmem>>) attributes {dimension_semantics = [#tpu.dimension_semantics<parallel>], iteration_bounds = array<i64: 1>, scalar_prefetch = 0 : i64, scratch_operands = 0 : i64, tpu.core_type = #tpu.core_type<tc>, window_params = [{transform_indices = @transform_0, window_bounds = array<i64: 2, 16, 32>}, {pipeline_mode = #tpu.pipeline_mode<synchronous>, transform_indices = @transform_1, window_bounds = array<i64: 32, 128>}, {pipeline_mode = #tpu.pipeline_mode<synchronous>, transform_indices = @transform_2, window_bounds = array<i64: 3, 8>}, {pipeline_mode = #tpu.pipeline_mode<synchronous>, transform_indices = @transform_3, window_bounds = array<i64: 24, 128>}, {pipeline_mode = #tpu.pipeline_mode<synchronous>, transform_indices = @transform_4, window_bounds = array<i64: 1, 128>}, {transform_indices = @transform_5, window_bounds = array<i64: 2, 128>}]} {
    %c0 = arith.constant 0 : index
    %c0_0 = arith.constant 0 : index
    %c0_1 = arith.constant 0 : index
    %0 = vector.load %arg1[%c0, %c0_0, %c0_1] : memref<2x16x32xbf16, #tpu.memory_space<vmem>>, vector<2x16x32xbf16>
    %1 = vector.shape_cast %0 : vector<2x16x32xbf16> to vector<32x32xbf16>
    %c0_2 = arith.constant 0 : index
    %c0_3 = arith.constant 0 : index
    %2 = vector.load %arg2[%c0_2, %c0_3] : memref<32x128xbf16, #tpu.memory_space<vmem>>, vector<32x128xbf16>
    %cst = arith.constant dense<0.000000e+00> : vector<32x128xf32>
    %3 = tpu.matmul %1, %2, %cst {dimension_numbers = #tpu.dot_dimension_numbers<[1], [0], [0], [1], [0, 0, 1, 1], [], []>} : vector<32x32xbf16>, vector<32x128xbf16>, vector<32x128xf32> -> vector<32x128xf32>
    %4 = vector.shape_cast %3 : vector<32x128xf32> to vector<2x16x128xf32>
    %cst_4 = arith.constant 0.000000e+00 : f32
    %5 = vector.broadcast %cst_4 : f32 to vector<2x128xf32>
    %6 = vector.extract_strided_slice %4 {offsets = [0, 0, 0], sizes = [2, 15, 8], strides = [1, 1, 1]} : vector<2x16x128xf32> to vector<2x15x8xf32>
    %7 = vector.extract_strided_slice %4 {offsets = [0, 1, 8], sizes = [2, 15, 8], strides = [1, 1, 1]} : vector<2x16x128xf32> to vector<2x15x8xf32>
    %8 = arith.addf %6, %7 : vector<2x15x8xf32>
    %cst_5 = arith.constant dense<0xFF800000> : vector<2x8xf32>
    %9 = vector.multi_reduction <maximumf>, %8, %cst_5 [1] : vector<2x15x8xf32> to vector<2x8xf32>
    %c0_6 = arith.constant 0 : index
    %c0_7 = arith.constant 0 : index
    %10 = vector.load %arg3[%c0_6, %c0_7] : memref<3x8xf32, #tpu.memory_space<vmem>>, vector<1x8xf32>
    %11 = vector.broadcast %10 : vector<1x8xf32> to vector<2x8xf32>
    %12 = arith.addf %9, %11 : vector<2x8xf32>
    %cst_8 = arith.constant 0.000000e+00 : f32
    %13 = vector.broadcast %cst_8 : f32 to vector<2x8xf32>
    %14 = arith.maximumf %12, %13 : vector<2x8xf32>
    %15 = arith.truncf %14 : vector<2x8xf32> to vector<2x8xbf16>
    %c0_9 = arith.constant 0 : index
    %c0_10 = arith.constant 0 : index
    %16 = vector.load %arg4[%c0_9, %c0_10] : memref<24x128xbf16, #tpu.memory_space<vmem>>, vector<8x128xbf16>
    %cst_11 = arith.constant dense<0.000000e+00> : vector<2x128xf32>
    %17 = tpu.matmul %15, %16, %cst_11 {dimension_numbers = #tpu.dot_dimension_numbers<[1], [0], [0], [1], [0, 0, 1, 1], [], []>} : vector<2x8xbf16>, vector<8x128xbf16>, vector<2x128xf32> -> vector<2x128xf32>
    %18 = arith.addf %5, %17 : vector<2x128xf32>
    %19 = vector.extract_strided_slice %4 {offsets = [0, 0, 16], sizes = [2, 14, 8], strides = [1, 1, 1]} : vector<2x16x128xf32> to vector<2x14x8xf32>
    %20 = vector.extract_strided_slice %4 {offsets = [0, 1, 24], sizes = [2, 14, 8], strides = [1, 1, 1]} : vector<2x16x128xf32> to vector<2x14x8xf32>
    %21 = arith.addf %19, %20 : vector<2x14x8xf32>
    %22 = vector.extract_strided_slice %4 {offsets = [0, 2, 32], sizes = [2, 14, 8], strides = [1, 1, 1]} : vector<2x16x128xf32> to vector<2x14x8xf32>
    %23 = arith.addf %21, %22 : vector<2x14x8xf32>
    %cst_12 = arith.constant dense<0xFF800000> : vector<2x8xf32>
    %24 = vector.multi_reduction <maximumf>, %23, %cst_12 [1] : vector<2x14x8xf32> to vector<2x8xf32>
    %c1 = arith.constant 1 : index
    %c0_13 = arith.constant 0 : index
    %25 = vector.load %arg3[%c1, %c0_13] : memref<3x8xf32, #tpu.memory_space<vmem>>, vector<1x8xf32>
    %26 = vector.broadcast %25 : vector<1x8xf32> to vector<2x8xf32>
    %27 = arith.addf %24, %26 : vector<2x8xf32>
    %cst_14 = arith.constant 0.000000e+00 : f32
    %28 = vector.broadcast %cst_14 : f32 to vector<2x8xf32>
    %29 = arith.maximumf %27, %28 : vector<2x8xf32>
    %30 = arith.truncf %29 : vector<2x8xf32> to vector<2x8xbf16>
    %c8 = arith.constant 8 : index
    %c0_15 = arith.constant 0 : index
    %31 = vector.load %arg4[%c8, %c0_15] : memref<24x128xbf16, #tpu.memory_space<vmem>>, vector<8x128xbf16>
    %cst_16 = arith.constant dense<0.000000e+00> : vector<2x128xf32>
    %32 = tpu.matmul %30, %31, %cst_16 {dimension_numbers = #tpu.dot_dimension_numbers<[1], [0], [0], [1], [0, 0, 1, 1], [], []>} : vector<2x8xbf16>, vector<8x128xbf16>, vector<2x128xf32> -> vector<2x128xf32>
    %33 = arith.addf %18, %32 : vector<2x128xf32>
    %34 = vector.extract_strided_slice %4 {offsets = [0, 0, 40], sizes = [2, 13, 8], strides = [1, 1, 1]} : vector<2x16x128xf32> to vector<2x13x8xf32>
    %35 = vector.extract_strided_slice %4 {offsets = [0, 1, 48], sizes = [2, 13, 8], strides = [1, 1, 1]} : vector<2x16x128xf32> to vector<2x13x8xf32>
    %36 = arith.addf %34, %35 : vector<2x13x8xf32>
    %37 = vector.extract_strided_slice %4 {offsets = [0, 2, 56], sizes = [2, 13, 8], strides = [1, 1, 1]} : vector<2x16x128xf32> to vector<2x13x8xf32>
    %38 = arith.addf %36, %37 : vector<2x13x8xf32>
    %39 = vector.extract_strided_slice %4 {offsets = [0, 3, 64], sizes = [2, 13, 8], strides = [1, 1, 1]} : vector<2x16x128xf32> to vector<2x13x8xf32>
    %40 = arith.addf %38, %39 : vector<2x13x8xf32>
    %cst_17 = arith.constant dense<0xFF800000> : vector<2x8xf32>
    %41 = vector.multi_reduction <maximumf>, %40, %cst_17 [1] : vector<2x13x8xf32> to vector<2x8xf32>
    %c2 = arith.constant 2 : index
    %c0_18 = arith.constant 0 : index
    %42 = vector.load %arg3[%c2, %c0_18] : memref<3x8xf32, #tpu.memory_space<vmem>>, vector<1x8xf32>
    %43 = vector.broadcast %42 : vector<1x8xf32> to vector<2x8xf32>
    %44 = arith.addf %41, %43 : vector<2x8xf32>
    %cst_19 = arith.constant 0.000000e+00 : f32
    %45 = vector.broadcast %cst_19 : f32 to vector<2x8xf32>
    %46 = arith.maximumf %44, %45 : vector<2x8xf32>
    %47 = arith.truncf %46 : vector<2x8xf32> to vector<2x8xbf16>
    %c16 = arith.constant 16 : index
    %c0_20 = arith.constant 0 : index
    %48 = vector.load %arg4[%c16, %c0_20] : memref<24x128xbf16, #tpu.memory_space<vmem>>, vector<8x128xbf16>
    %cst_21 = arith.constant dense<0.000000e+00> : vector<2x128xf32>
    %49 = tpu.matmul %47, %48, %cst_21 {dimension_numbers = #tpu.dot_dimension_numbers<[1], [0], [0], [1], [0, 0, 1, 1], [], []>} : vector<2x8xbf16>, vector<8x128xbf16>, vector<2x128xf32> -> vector<2x128xf32>
    %50 = arith.addf %33, %49 : vector<2x128xf32>
    %c0_22 = arith.constant 0 : index
    %c0_23 = arith.constant 0 : index
    %51 = vector.load %arg5[%c0_22, %c0_23] : memref<1x128xf32, #tpu.memory_space<vmem>>, vector<1x128xf32>
    %52 = vector.broadcast %51 : vector<1x128xf32> to vector<2x128xf32>
    %53 = arith.addf %50, %52 : vector<2x128xf32>
    %c0_24 = arith.constant 0 : index
    %c0_25 = arith.constant 0 : index
    %54 = vector.load %arg6[%c0_24, %c0_25] : memref<2x128xf32, #tpu.memory_space<vmem>>, vector<2x128xf32>
    tpu.vector_store %arg6[%c0_24, %c0_25], %53 {strides = array<i32>} : memref<2x128xf32, #tpu.memory_space<vmem>>, vector<2x128xf32>,
    return
  }
  func.func @transform_0(%arg0: i32) -> (i32, i32, i32) {
    %c0_i32 = arith.constant 0 : i32
    %c0_i32_0 = arith.constant 0 : i32
    %c0_i32_1 = arith.constant 0 : i32
    return %arg0, %c0_i32, %c0_i32_0 : i32, i32, i32
  }
  func.func @transform_1(%arg0: i32) -> (i32, i32) {
    %c0_i32 = arith.constant 0 : i32
    %c0_i32_0 = arith.constant 0 : i32
    %c0_i32_1 = arith.constant 0 : i32
    return %c0_i32, %c0_i32_0 : i32, i32
  }
  func.func @transform_2(%arg0: i32) -> (i32, i32) {
    %c0_i32 = arith.constant 0 : i32
    %c0_i32_0 = arith.constant 0 : i32
    %c0_i32_1 = arith.constant 0 : i32
    return %c0_i32, %c0_i32_0 : i32, i32
  }
  func.func @transform_3(%arg0: i32) -> (i32, i32) {
    %c0_i32 = arith.constant 0 : i32
    %c0_i32_0 = arith.constant 0 : i32
    %c0_i32_1 = arith.constant 0 : i32
    return %c0_i32, %c0_i32_0 : i32, i32
  }
  func.func @transform_4(%arg0: i32) -> (i32, i32) {
    %c0_i32 = arith.constant 0 : i32
    %c0_i32_0 = arith.constant 0 : i32
    %c0_i32_1 = arith.constant 0 : i32
    return %c0_i32, %c0_i32_0 : i32, i32
  }
  func.func @transform_5(%arg0: i32) -> (i32, i32) {
    %c0_i32 = arith.constant 0 : i32
    %c0_i32_0 = arith.constant 0 : i32
    return %arg0, %c0_i32 : i32, i32
  }
}

</mosaic_0001>

<bundles_post_ra>
// kernel: tpu_custom_call.1
= control target key start
LH: loop header
LB: loop body
LE: loop exit
PB: predicated region body
PF: predicated region fallthrough
CT: control target
= control target key end

     0   :  { %10 = vsyncpa [#allocation3], 0  ;;  %s684_s0 = inlined_call_operand.hbm [shape: bf16[2,16,32], index: 0, kind: input, shape index: {}]   ;;  %s685_s1 = inlined_call_operand.hbm [shape: bf16[32,128], index: 1, kind: input, shape index: {}]   ;;  %s686_s2 = inlined_call_operand.hbm [shape: f32[3,8], index: 2, kind: input, shape index: {}]   ;;  %s687_s3 = inlined_call_operand.hbm [shape: bf16[24,128], index: 3, kind: input, shape index: {}]   ;;  %s688_s4 = inlined_call_operand.vmem [shape: f32[1,128], index: 4, kind: input, shape index: {}]   ;;  %s689_s5 = inlined_call_operand.hbm [shape: f32[2,128], index: 5, kind: output, shape index: {}]  }
   0x1   :  { %11 = vsyncpa [#allocation6], 0 }
   0x2   :  { %12 = vsyncpa [#allocation9], 0 }
   0x3   :  { %13 = vsyncpa [#allocation4], 0  ;;  %s31_s20 = sshll.u32 %s685_s1, 4  ;;  %s587_s21 = smov [#allocation5]   ;;  %s32_s20 = int_to_ptr.hbm [resolvable:$true] %s31_s20 }
   0x4   :  { %s33_s22 = sshll.u32 %s587_s21, 4  ;;  %s18_s25 = sshll.u32 %s684_s0, 4  ;;  %s34_s22 = int_to_ptr.vmem [resolvable:$true] %s33_s22  ;;  %s19_s25 = int_to_ptr.hbm [resolvable:$true] %s18_s25 }
   0x5   :  { %s588_s26 = smov 64   ;;  %s589_s27 = smov 4  }
   0x6   :  { %39 = dma.hbm_to_vmem [thread:$0]  %s32_s20, 256, %s34_s22, [#allocation6], %s588_s26, %s588_s26, %s589_s27  }
   0x7   :  { %s590_s28 = smov [#allocation2]   ;;  %s45_s7 = sshll.u32 %s686_s2, 4  ;;  %s46_s7 = int_to_ptr.hbm [resolvable:$true] %s45_s7 }
   0x8   :  { %s20_s29 = sshll.u32 %s590_s28, 4  ;;  %s55_s9 = sshll.u32 %s687_s3, 4  ;;  %s21_s29 = int_to_ptr.vmem [resolvable:$true] %s20_s29  ;;  %s56_s9 = int_to_ptr.hbm [resolvable:$true] %s55_s9 }
   0x9   :  { %26 = dma.hbm_to_vmem [thread:$0]  %s19_s25, 256, %s21_s29, [#allocation3], %s588_s26, %s588_s26, %s589_s27  }
   0xa   :  { %s591_s10 = smov [#allocation7]   ;;  %s592_s0 = smov [#allocation8]  }
   0xb   :  { %s47_s11 = sshll.u32 %s591_s10, 4  ;;  %s57_s12 = sshll.u32 %s592_s0, 4  ;;  %s48_s11 = int_to_ptr.vmem [resolvable:$true] %s47_s11  ;;  %s58_s12 = int_to_ptr.vmem [resolvable:$true] %s57_s12 }
   0xc   :  { %50 = dma.hbm_to_vmem [thread:$0]  %s46_s7, 64, %s48_s11, [#allocation6]  }
   0xd   :  { %63 = dma.hbm_to_vmem [thread:$0]  %s56_s9, 192, %s58_s12, [#allocation9], %s588_s26, %s588_s26, %s589_s27  }
   0xe   :  { %579 = dma.done.wait [#allocation3], 256  }
   0xf   :  { %580 = vsyncadd [#allocation3], 4294967040 }
  0x10   :  { %581 = dma.done.wait [#allocation6], 320  }
  0x11   :  { %582 = vsyncadd [#allocation6], 4294966976 }
  0x12   :  { %583 = dma.done.wait [#allocation9], 192  }
  0x13   :  { %584 = vsyncadd [#allocation9], 4294967104  ;;  %v441_v0 = vld [vmem:[#allocation5 + $0x8] sm:$0xff]  ;;  %v440_v1 = vld [vmem:[#allocation5] sm:$0xff]  ;;  %vm113_vm0 = vcmask 261120   ;;  %vm195_vm1 = vcmask 1045504  }
  0x14   :  { %126 = vmatpush.bf16.msra.mxu0 %v441_v0  ;;  %v438_v2 = vld [vmem:[#allocation2] sm:$0xff]  ;;  %v439_v3 = vld [vmem:[#allocation2 + $0x8] sm:$0xff]  ;;  %s593_s2 = smov 120   ;;  %s594_s3 = smov 112   ;;  %vm143_vm2 = vcmask 1046528   ;;  %vm307_vm3 = vcmask 1044480  }
  0x15   :  { %s595_s13 = smov 104   ;;  %v455_v24 = vld [vmem:[#allocation7 + $0x1] ss:$0 sm:$0xff]  ;;  %s596_s14 = smov 16   ;;  %v456_v27 = vld [vmem:[#allocation7 + $0x2] ss:$0 sm:$0xff] }
  0x16   :  { %s597_s15 = smov 40   ;;  %vm168_vm4 = vcmask 63488   ;;  %vm166_vm5 = vcmask 64512   ;;  %vm220_vm6 = vcmask 193664   ;;  %vm218_vm7 = vcmask 195712   ;;  %s598_s16 = smov 88  }
  0x17   :  { %v194_v42 = vld [vmem:[#allocation8] sm:$0xf]  ;;  %vm264_vm8 = vcmask 1043456   ;;  %vm332_vm9 = vcmask 389440   ;;  %vm330_vm10 = vcmask 392512   ;;  %vm256_vm11 = vcmask 1041409  }
  0x18   :  { %127 = vmatpush.bf16.msra.mxu0 %v440_v1  ;;  %v292_v45 = vsel %vm264_vm8, %v194_v42, 0  ;;  %s599_s19 = smov [#allocation10]   ;;  %s405_s23 = sshll.u32 %s689_s5, 4  ;;  %s406_s23 = int_to_ptr.hbm [resolvable:$true] %s405_s23 }
  0x19   :  { %301 = vmatpush.bf16.msra.mxu2 %v292_v45  ;;  %s403_s20 = sshll.u32 %s599_s19, 4  ;;  %s404_s20 = int_to_ptr.vmem [resolvable:$true] %s403_s20 }
  0x1b   :  { %433 = vmatmul.msk.bf16.vlgmr.msra.gmra.mxu0 %vm113_vm0, %v438_v2 }
  0x2b   :  { %434 = vmatmul.msk.bf16.gmra.mxu0 %vm113_vm0, %v439_v3 }
  0x98   :  { %v129_v4 = vpop.f32.mrf.mxu0 }
  0x99   :  { %v196_v7 = vrot.slane %v129_v4, 2  ;;  %v144_v11 = vrot.slane %v129_v4, 1  ;;  %v308_v17 = vrot.slane %v129_v4, 3 }
  0xa0   :  { %v131_v5 = vpop.f32.mrf.mxu0 }
  0xa1   :  { %v145_v6 = vrot.slane %v131_v5, 1  ;;  %v197_v8 = vrot.slane %v131_v5, 2  ;;  %v309_v16 = vrot.slane %v131_v5, 3 }
  0xa3   :  { %152 = vrot.lane.b32.xlu1 %v145_v6, %s593_s2  ;;  %v198_v9 = vsel %vm195_vm1, %v196_v7, %v197_v8  ;;  %v146_v15 = vsel %vm143_vm2, %v144_v11, %v145_v6  ;;  %v310_v20 = vsel %vm307_vm3, %v308_v17, %v309_v16 }
  0xa4   :  { %202 = vrot.lane.b32.xlu0 %v198_v9, %s594_s3 }
  0xa8   :  { %v644_v10 = vpop.f32.mrf.mxu0 }
  0xa9   :  { %v199_v18 = vrot.slane %v644_v10, 2  ;;  %v147_v19 = vrot.slane %v644_v10, 1  ;;  %v311_v25 = vrot.slane %v644_v10, 3 }
  0xab   :  { %204 = vrot.lane.b32.xlu1 %v197_v8, %s594_s3 }
  0xb0   :  { %v136_v12 = vpop.f32.mrf.mxu0 }
  0xb1   :  { %v148_v13 = vrot.slane %v136_v12, 1  ;;  %v200_v14 = vrot.slane %v136_v12, 2  ;;  %v312_v23 = vrot.slane %v136_v12, 3 }
  0xb3   :  { %150 = vrot.lane.b32.xlu1 %v146_v15, %s593_s2  ;;  %208 = vrot.lane.b32.xlu2 %v200_v14, %s594_s3  ;;  %v201_v21 = vsel %vm195_vm1, %v199_v18, %v200_v14  ;;  %v149_v22 = vsel %vm143_vm2, %v147_v19, %v148_v13  ;;  %v313_v26 = vsel %vm307_vm3, %v311_v25, %v312_v23  ;;  %v362_v15 = vld [vmem:[#allocation8 + $0x8] sm:$0xf] }
  0xb4   :  { %156 = vrot.lane.b32.xlu0 %v148_v13, %s593_s2 }
  0xbb   :  { %314 = vrot.lane.b32.xlu1 %v310_v20, %s595_s13  ;;  %206 = vrot.lane.b32.xlu2 %v201_v21, %s594_s3  ;;  %v376_v20 = vsel %vm264_vm8, %v362_v15, 0 }
  0xbc   :  { %154 = vrot.lane.b32.xlu0 %v149_v22, %s593_s2  ;;  %385 = vmatpush.bf16.msra.mxu3 %v376_v20 }
  0xc3   :  { %318 = vrot.lane.b32.xlu2 %v313_v26, %s595_s13  ;;  %241 = vrot.lane.b32.xlu1 %v455_v24, %s596_s14  ;;  %v457_v24 = vld [vmem:[#allocation7] ss:$0 sm:$0xff] }
  0xc4   :  { %320 = vrot.lane.b32.xlu0 %v312_v23, %s595_s13 }
  0xcb   :  { %316 = vrot.lane.b32.xlu2 %v309_v16, %s595_s13 }
  0xcc   :  { %353 = vrot.lane.b32.xlu0 %v456_v27, %s597_s15 }
 0x10d   :  { %v209_v28 = vpop.permute.xlu2 %208 }
 0x115   :  { %v153_v29 = vpop.permute.xlu1 %152  ;;  %v207_v30 = vpop.permute.xlu2 %206 }
 0x116   :  { %v203_v32 = vpop.permute.xlu0 %202  ;;  %v163_v34 = vadd.f32 %v153_v29, %v131_v5 }
 0x118   :  { %v169_v39 = vsel %vm168_vm4, %v163_v34, -inf }
 0x11d   :  { %v205_v31 = vpop.permute.xlu1 %204  ;;  %v319_v33 = vpop.permute.xlu2 %318 }
 0x11e   :  { %v215_v36 = vadd.f32 %v205_v31, %v163_v34 }
 0x120   :  { %v221_v46 = vsel %vm220_vm6, %v215_v36, -inf }
 0x125   :  { %v151_v35 = vpop.permute.xlu1 %150  ;;  %v317_v44 = vpop.permute.xlu2 %316 }
 0x126   :  { %v162_v37 = vadd.f32 %v151_v35, %v129_v4  ;;  %v157_v38 = vpop.permute.xlu0 %156  ;;  %v327_v51 = vadd.f32 %v317_v44, %v215_v36 }
 0x127   :  { %v165_v49 = vadd.f32 %v157_v38, %v136_v12 }
 0x128   :  { %v167_v40 = vsel %vm166_vm5, %v162_v37, -inf  ;;  %v214_v41 = vadd.f32 %v203_v32, %v162_v37  ;;  %v333_v61 = vsel %vm332_vm9, %v327_v51, -inf }
 0x129   :  { %v170_v43 = vmax.f32 %v167_v40, %v169_v39  ;;  %v217_v59 = vadd.f32 %v209_v28, %v165_v49  ;;  %v178_v62 = vsel %vm168_vm4, %v165_v49, -inf }
 0x12a   :  { %v219_v47 = vsel %vm218_vm7, %v214_v41, -inf }
 0x12b   :  { %v171_v48 = vrot.slane %v170_v43, 4  ;;  %v222_v50 = vmax.f32 %v219_v47, %v221_v46  ;;  %v230_v9 = vsel %vm220_vm6, %v217_v59, -inf }
 0x12d   :  { %v172_v52 = vmax.f32 %v170_v43, %v171_v48  ;;  %v223_v53 = vrot.slane %v222_v50, 4  ;;  %v315_v54 = vpop.permute.xlu1 %314 }
 0x12e   :  { %v326_v55 = vadd.f32 %v315_v54, %v214_v41  ;;  %v155_v56 = vpop.permute.xlu0 %154 }
 0x12f   :  { %v173_v57 = vrot.slane %v172_v52, 2  ;;  %v164_v58 = vadd.f32 %v155_v56, %v644_v10  ;;  %v224_v60 = vmax.f32 %v222_v50, %v223_v53 }
 0x130   :  { %v331_v63 = vsel %vm330_vm10, %v326_v55, -inf }
 0x131   :  { %v174_v0 = vmax.f32 %v172_v52, %v173_v57  ;;  %v334_v1 = vmax.f32 %v331_v63, %v333_v61  ;;  %v177_v2 = vsel %vm166_vm5, %v164_v58, -inf  ;;  %v216_v3 = vadd.f32 %v207_v30, %v164_v58 }
 0x132   :  { %v179_v4 = vmax.f32 %v177_v2, %v178_v62  ;;  %v225_v5 = vrot.slane %v224_v60, 2 }
 0x133   :  { %v175_v6 = vrot.slane %v174_v0, 1  ;;  %v335_v7 = vrot.slane %v334_v1, 4  ;;  %v229_v8 = vsel %vm218_vm7, %v216_v3, -inf  ;;  %v328_v14 = vadd.f32 %v319_v33, %v216_v3 }
 0x134   :  { %v180_v10 = vrot.slane %v179_v4, 4  ;;  %v231_v11 = vmax.f32 %v229_v8, %v230_v9  ;;  %v226_v12 = vmax.f32 %v224_v60, %v225_v5 }
 0x135   :  { %v336_v13 = vmax.f32 %v334_v1, %v335_v7  ;;  %v176_v21 = vmax.f32 %v174_v0, %v175_v6  ;;  %v341_v27 = vsel %vm330_vm10, %v328_v14, -inf  ;;  %v242_v34 = vpop.permute.xlu1 %241 }
 0x136   :  { %v181_v16 = vmax.f32 %v179_v4, %v180_v10  ;;  %v232_v17 = vrot.slane %v231_v11, 4  ;;  %v321_v18 = vpop.permute.xlu0 %320  ;;  %v227_v19 = vrot.slane %v226_v12, 1 }
 0x137   :  { %v337_v22 = vrot.slane %v336_v13, 2  ;;  %v329_v23 = vadd.f32 %v321_v18, %v217_v59  ;;  %v188_v35 = vadd.f32 %v457_v24, %v176_v21  ;;  %v250_v18 = vld [vmem:[#allocation8 + $0x4] sm:$0xf] }
 0x138   :  { %v182_v25 = vrot.slane %v181_v16, 2  ;;  %v233_v26 = vmax.f32 %v231_v11, %v232_v17  ;;  %v228_v32 = vmax.f32 %v226_v12, %v227_v19  ;;  %v266_v19 = vsel %vm264_vm8, %v250_v18, 0 }
 0x139   :  { %v342_v28 = vsel %vm332_vm9, %v329_v23, -inf  ;;  %v338_v29 = vmax.f32 %v336_v13, %v337_v22  ;;  %v190_v44 = vmax.f32 %v188_v35, 0.0  ;;  %275 = vmatpush.bf16.msra.mxu1 %v266_v19 }
 0x13a   :  { %v183_v30 = vmax.f32 %v181_v16, %v182_v25  ;;  %v343_v31 = vmax.f32 %v341_v27, %v342_v28  ;;  %v234_v33 = vrot.slane %v233_v26, 2  ;;  %v244_v43 = vadd.f32 %v242_v34, %v228_v32  ;;  %v458_v28 = vld [vmem:[%s688_s4] ss:$0 sm:$0xff] }
 0x13b   :  { %v339_v39 = vrot.slane %v338_v29, 1  ;;  %v192_v54 = vpack.c.bf16 %v190_v44, %v190_v44 }
 0x13c   :  { %v184_v36 = vrot.slane %v183_v30, 1  ;;  %v344_v37 = vrot.slane %v343_v31, 4  ;;  %v235_v38 = vmax.f32 %v233_v26, %v234_v33  ;;  %v246_v51 = vmax.f32 %v244_v43, 0.0 }
 0x13d   :  { %v340_v47 = vmax.f32 %v338_v29, %v339_v39  ;;  %v283_v63 = vunpack.c.l.b16 %v192_v54 }
 0x13e   :  { %v185_v40 = vmax.f32 %v183_v30, %v184_v36  ;;  %v345_v41 = vmax.f32 %v343_v31, %v344_v37  ;;  %v236_v42 = vrot.slane %v235_v38, 1  ;;  %v354_v49 = vpop.permute.xlu0 %353  ;;  %v248_v59 = vpack.c.bf16 %v246_v51, %v246_v51 }
 0x13f   :  { %v356_v57 = vadd.f32 %v354_v49, %v340_v47 }
 0x140   :  { %v346_v45 = vrot.slane %v345_v41, 2  ;;  %v237_v46 = vmax.f32 %v235_v38, %v236_v42  ;;  %v189_v48 = vadd.f32 %v457_v24, %v185_v40  ;;  %v253_v4 = vunpack.c.l.b16 %v248_v59 }
 0x141   :  { %v358_v2 = vmax.f32 %v356_v57, 0.0 }
 0x142   :  { %v245_v50 = vadd.f32 %v242_v34, %v237_v46  ;;  %v347_v52 = vmax.f32 %v345_v41, %v346_v45  ;;  %v191_v53 = vmax.f32 %v189_v48, 0.0 }
 0x143   :  { %v360_v9 = vpack.c.bf16 %v358_v2, %v358_v2 }
 0x144   :  { %v247_v55 = vmax.f32 %v245_v50, 0.0  ;;  %v348_v56 = vrot.slane %v347_v52, 1  ;;  %v193_v58 = vpack.c.bf16 %v191_v53, %v191_v53 }
 0x145   :  { %v365_v14 = vunpack.c.l.b16 %v360_v9 }
 0x146   :  { %v249_v60 = vpack.c.bf16 %v247_v55, %v247_v55  ;;  %v349_v61 = vmax.f32 %v347_v52, %v348_v56  ;;  %v284_v62 = vunpack.c.l.b16 %v193_v58 }
 0x148   :  { %v254_v0 = vunpack.c.l.b16 %v249_v60  ;;  %v357_v1 = vadd.f32 %v354_v49, %v349_v61  ;;  %v285_v3 = vrot.slane %v284_v62, 7 }
 0x14a   :  { %v255_v5 = vrot.slane %v254_v0, 7  ;;  %v359_v6 = vmax.f32 %v357_v1, 0.0  ;;  %v286_v7 = vsel %vm256_vm11, %v285_v3, %v283_v63 }
 0x14b   :  { %v287_v8 = vpack.c.b16 %v286_v7, %v286_v7 }
 0x14c   :  { %v361_v10 = vpack.c.bf16 %v359_v6, %v359_v6  ;;  %v257_v11 = vsel %vm256_vm11, %v255_v5, %v253_v4 }
 0x14d   :  { %436 = vmatmul.msk.bf16.vlgmr.msra.gmra.mxu2 %vm166_vm5, %v287_v8  ;;  %v258_v12 = vpack.c.b16 %v257_v11, %v257_v11 }
 0x14e   :  { %v366_v13 = vunpack.c.l.b16 %v361_v10 }
 0x14f   :  { %259 = vrot.lane.b32.xlu0 %v258_v12, %s594_s3 }
 0x150   :  { %v367_v15 = vrot.slane %v366_v13, 7 }
 0x152   :  { %v368_v16 = vsel %vm256_vm11, %v367_v15, %v365_v14 }
 0x153   :  { %v369_v17 = vpack.c.b16 %v368_v16, %v368_v16 }
 0x155   :  { %370 = vrot.lane.b32.xlu2 %v369_v17, %s598_s16 }
 0x1af   :  { %v371_v20 = vpop.permute.xlu2 %370 }
 0x1b0   :  { %437 = vmatmul.msk.bf16.vlgmr.msra.gmra.mxu3 %vm166_vm5, %v371_v20 }
 0x1c1   :  { %v260_v21 = vpop.permute.xlu0 %259 }
 0x1c2   :  { %435 = vmatmul.msk.bf16.vlgmr.msra.gmra.mxu1 %vm166_vm5, %v260_v21 }
 0x1d0   :  { %v303_v22 = vpop.f32.mrf.mxu2 }
 0x1d8   :  { %v305_v23 = vpop.f32.mrf.mxu2 }
 0x233   :  { %v387_v24 = vpop.f32.mrf.mxu3 }
 0x23b   :  { %v389_v25 = vpop.f32.mrf.mxu3 }
 0x23f   :  { %v277_v26 = vpop.f32.mrf.mxu1 }
 0x240   :  { %v304_v27 = vadd.f32 %v303_v22, %v277_v26 }
 0x242   :  { %v391_v29 = vadd.f32 %v387_v24, %v304_v27 }
 0x244   :  { %v396_v30 = vadd.f32 %v458_v28, %v391_v29 }
 0x246   :  { %397 = vst [vmem:[#allocation10] sm:$0x3] %v396_v30 }
 0x247   :  { %v279_v31 = vpop.f32.mrf.mxu1  ;;  %408 = dma.vmem_to_hbm [thread:$0]  %s404_s20, 32, %s406_s23, [#allocation4]  }
 0x248   :  { %585 = dma.done.wait [#allocation4], 32  }
 0x249   :  { %586 = vsyncadd [#allocation4], 4294967264 }
 0x24a   :  { %413 = vsyncpa [#allocation3], 1 }
 0x24b   :  { %414 = vsyncpa [#allocation6], 1 }
 0x24c   :  { %415 = vsyncpa [#allocation9], 1 }
 0x24d   :  { %416 = vsyncpa [#allocation4], 1 }

</bundles_post_ra>
